<compile_context>
chip_gen: v7x
topology: tpu7x:2x2x1
jax: 0.10.0
libtpu: 0.0.40
codegen_flags: <defaults>
</compile_context>

<pallas_src>
import functools

import jax
import jax.numpy as jnp
from jax import lax
from jax.experimental import pallas as pl
from jax.experimental.pallas import tpu as pltpu


def _round_up(x, m):
    return (x + m - 1) // m * m


def _dense_gelu_kernel(x_ref, w_ref, b_ref, o_ref):
    """Fused GELU(x @ W + b) for one (tm, N) output row block.

    W and bias use constant block indices, so they stay VMEM-resident across the grid.
    """
    # Cast the activation tile to the weight dtype (bf16) in-kernel; the HBM copy of x
    # keeps its original dtype so no separate XLA cast op / extra HBM traffic is added.
    x = x_ref[...].astype(w_ref.dtype)
    acc = jnp.dot(x, w_ref[...], preferred_element_type=jnp.float32)
    y = acc + b_ref[...].astype(jnp.float32)
    # Exact GELU: 0.5 * y * (1 + erf(y / sqrt(2)))  (matches nn.GELU() default).
    # TODO(synk): if a bundle dump shows the erf polynomial saturating the VALU slot
    # after the bf16 matmul, switch to tanh-approx GELU so the transcendental lands on
    # the EUP slot; kept exact here to preserve the module's nn.GELU() semantics.
    inv_sqrt2 = jnp.float32(0.7071067811865476)
    g = 0.5 * y * (1.0 + lax.erf(y * inv_sqrt2))
    o_ref[...] = g.astype(o_ref.dtype)


def dense_gelu(x2d, w, b2d, *, tm=256, out_dtype=None):
    """GELU(x2d @ w + b).

    x2d : [M, K]  activations (any float dtype; cast to w.dtype inside the kernel)
    w   : [K, N]  weights, pre-cast (e.g. bf16) and pre-padded so N % 128 == 0
    b2d : [1, N]  bias (f32), padded to match w

    Grid iterates only over row blocks of x; W / bias have constant index_maps and are
    therefore streamed from HBM exactly once and kept resident in VMEM.
    """
    if out_dtype is None:
        out_dtype = x2d.dtype
    M, K = x2d.shape
    K2, N = w.shape
    assert K == K2, (K, K2)
    assert N % 128 == 0, N
    assert b2d.shape == (1, N), b2d.shape

    # Clamp the row tile for small problems, pad M only in the rare ragged case.
    tm = min(tm, _round_up(M, 8))
    M_pad = _round_up(M, tm)
    if M_pad != M:
        # K is never padded, so the reduction stays exact; padded output rows are
        # sliced away below.
        x2d = jnp.pad(x2d, ((0, M_pad - M), (0, 0)))

    grid = (M_pad // tm,)

    nbytes = lambda a: a.size * a.dtype.itemsize
    cost = pl.CostEstimate(
        flops=2 * M_pad * N * K,
        transcendentals=M_pad * N,  # one erf per output element
        bytes_accessed=(nbytes(x2d) + nbytes(w) + nbytes(b2d)
                        + M_pad * N * jnp.dtype(out_dtype).itemsize),
    )

    out = pl.pallas_call(
        _dense_gelu_kernel,
        out_shape=jax.ShapeDtypeStruct((M_pad, N), out_dtype),
        grid_spec=pltpu.PrefetchScalarGridSpec(
            num_scalar_prefetch=0,
            grid=grid,
            in_specs=[
                pl.BlockSpec((tm, K), lambda i: (i, 0)),  # x row block, full K
                pl.BlockSpec((K, N), lambda i: (0, 0)),   # W: constant index -> fetched once
                pl.BlockSpec((1, N), lambda i: (0, 0)),   # bias: constant index -> fetched once
            ],
            out_specs=pl.BlockSpec((tm, N), lambda i: (i, 0)),
        ),
        compiler_params=pltpu.CompilerParams(
            # v7x: the two TensorCores split the row blocks; near-neutral on v5e/v6e.
            dimension_semantics=("parallel",),
            # bf16 BERT-base: W 4.5 MiB resident + 256x768 x tile + 256x3072 f32 out
            # tile (double-buffered) stay well under 48 MiB; fits v7x's 64 MiB physical.
            vmem_limit_bytes=48 * 1024 * 1024,
        ),
        cost_estimate=cost,
    )(x2d, w, b2d)

    if M_pad != M:
        out = out[:M]
    return out


class QILBertIntermediatePallas:
    """JAX/Pallas equivalent of QILBertIntermediate (fp / quant_mode=False path)."""

    def __init__(self, hidden_size, intermediate_size, key,
                 compute_dtype=jnp.bfloat16, tm=256):
        kw, kb = jax.random.split(key)
        # PyTorch nn.Linear stores weight as (out_features, in_features).
        bound = 1.0 / (hidden_size ** 0.5)
        self.weight = jax.random.uniform(
            kw, (intermediate_size, hidden_size), jnp.float32, -bound, bound
        )
        self.bias = jax.random.uniform(
            kb, (intermediate_size,), jnp.float32, -bound, bound
        )
        self.tm = tm
        self.intermediate_size = intermediate_size

        # One-time layout/dtype prep (static parameters -> no per-call HBM round-trips):
        #   * transpose to [H, I] for the kernel,
        #   * pad the lane (output) dim to a multiple of 128 (lane-dense stores),
        #   * cast W to bf16 (MXU-native); in-kernel accumulation stays f32.
        n_pad = _round_up(intermediate_size, 128)
        w_t = jnp.transpose(self.weight)  # [H, I]
        b = self.bias
        if n_pad != intermediate_size:
            w_t = jnp.pad(w_t, ((0, 0), (0, n_pad - intermediate_size)))
            b = jnp.pad(b, ((0, n_pad - intermediate_size),))
        self.w_kernel = w_t.astype(compute_dtype)
        self.b_kernel = b.reshape(1, n_pad).astype(jnp.float32)
        self.n_pad = n_pad

    @functools.partial(jax.jit, static_argnums=0)
    def __call__(self, hidden_states, hidden_states_scaling_factor, hidden_states_offset):
        B, S, H = hidden_states.shape
        x2d = hidden_states.reshape(B * S, H)
        out2d = dense_gelu(x2d, self.w_kernel, self.b_kernel,
                           tm=self.tm, out_dtype=hidden_states.dtype)
        if self.n_pad != self.intermediate_size:
            out2d = out2d[:, : self.intermediate_size]
        out = out2d.reshape(B, S, self.intermediate_size)
        # QILQuantAct in fp (quant_mode=False) mode is identity; scaling factor and
        # offset pass through unchanged.
        # TODO(synk): quant_mode=True interval-learning fake-quant depends on learned
        # clamp parameters from a checkpoint and is not implemented here.
        return out, hidden_states_scaling_factor, hidden_states_offset


if __name__ == "__main__":
    key = jax.random.PRNGKey(0)
    k_x, k_p = jax.random.split(key)

    batch, seq, hidden, intermediate = 2, 8, 32, 128
    hidden_states = jax.random.normal(k_x, (batch, seq, hidden), jnp.float32)
    hidden_states_scaling_factor = jnp.float32(1.0)
    hidden_states_offset = jnp.float32(0.0)

    module = QILBertIntermediatePallas(hidden, intermediate, k_p)
    out, sf, off = module(
        hidden_states, hidden_states_scaling_factor, hidden_states_offset
    )
    out = jax.block_until_ready(out)

    # Reference in plain JAX with matched bf16 operand rounding, f32 accumulation and
    # exact (erf) GELU — mirrors exactly what the kernel computes.
    x2d = hidden_states.reshape(-1, hidden)
    ref = jax.nn.gelu(
        jnp.dot(x2d.astype(jnp.bfloat16), module.w_kernel,
                preferred_element_type=jnp.float32)
        + module.b_kernel,
        approximate=False,
    ).reshape(batch, seq, intermediate)

    assert out.shape == (batch, seq, intermediate)
    assert sf == hidden_states_scaling_factor and off == hidden_states_offset
    assert jnp.allclose(out, ref, atol=1e-3, rtol=1e-3), float(
        jnp.max(jnp.abs(out - ref))
    )

    print("KERNEL_OK")
</pallas_src>

<mosaic_0001>
module attributes {stable_mosaic.version = 11 : i64} {
  func.func @_dense_gelu_kernel(%arg0: i32, %arg1: memref<16x32xf32, #tpu.memory_space<vmem>>, %arg2: memref<32x128xbf16, #tpu.memory_space<vmem>>, %arg3: memref<1x128xf32, #tpu.memory_space<vmem>>, %arg4: memref<16x128xf32, #tpu.memory_space<vmem>>) attributes {dimension_semantics = [#tpu.dimension_semantics<parallel>], iteration_bounds = array<i64: 1>, scalar_prefetch = 0 : i64, scratch_operands = 0 : i64, tpu.core_type = #tpu.core_type<tc>, window_params = [{transform_indices = @transform_0, window_bounds = array<i64: 16, 32>}, {pipeline_mode = #tpu.pipeline_mode<synchronous>, transform_indices = @transform_1, window_bounds = array<i64: 32, 128>}, {pipeline_mode = #tpu.pipeline_mode<synchronous>, transform_indices = @transform_2, window_bounds = array<i64: 1, 128>}, {transform_indices = @transform_3, window_bounds = array<i64: 16, 128>}]} {
    %c0 = arith.constant 0 : index
    %c0_0 = arith.constant 0 : index
    %0 = vector.load %arg1[%c0, %c0_0] : memref<16x32xf32, #tpu.memory_space<vmem>>, vector<16x32xf32>
    %1 = arith.truncf %0 : vector<16x32xf32> to vector<16x32xbf16>
    %c0_1 = arith.constant 0 : index
    %c0_2 = arith.constant 0 : index
    %2 = vector.load %arg2[%c0_1, %c0_2] : memref<32x128xbf16, #tpu.memory_space<vmem>>, vector<32x128xbf16>
    %cst = arith.constant dense<0.000000e+00> : vector<16x128xf32>
    %3 = tpu.matmul %1, %2, %cst {dimension_numbers = #tpu.dot_dimension_numbers<[1], [0], [0], [1], [0, 0, 1, 1], [], []>} : vector<16x32xbf16>, vector<32x128xbf16>, vector<16x128xf32> -> vector<16x128xf32>
    %c0_3 = arith.constant 0 : index
    %c0_4 = arith.constant 0 : index
    %4 = vector.load %arg3[%c0_3, %c0_4] : memref<1x128xf32, #tpu.memory_space<vmem>>, vector<1x128xf32>
    %5 = vector.broadcast %4 : vector<1x128xf32> to vector<16x128xf32>
    %6 = arith.addf %3, %5 : vector<16x128xf32>
    %cst_5 = arith.constant 5.000000e-01 : f32
    %7 = vector.broadcast %cst_5 : f32 to vector<16x128xf32>
    %8 = arith.mulf %7, %6 : vector<16x128xf32>
    %cst_6 = arith.constant 0.707106769 : f32
    %9 = vector.broadcast %cst_6 : f32 to vector<16x128xf32>
    %10 = arith.mulf %6, %9 : vector<16x128xf32>
    %11 = math.erf %10 : vector<16x128xf32>
    %cst_7 = arith.constant 1.000000e+00 : f32
    %12 = vector.broadcast %cst_7 : f32 to vector<16x128xf32>
    %13 = arith.addf %12, %11 : vector<16x128xf32>
    %14 = arith.mulf %8, %13 : vector<16x128xf32>
    %c0_8 = arith.constant 0 : index
    %c0_9 = arith.constant 0 : index
    %15 = vector.load %arg4[%c0_8, %c0_9] : memref<16x128xf32, #tpu.memory_space<vmem>>, vector<16x128xf32>
    tpu.vector_store %arg4[%c0_8, %c0_9], %14 {strides = array<i32>} : memref<16x128xf32, #tpu.memory_space<vmem>>, vector<16x128xf32>,
    return
  }
  func.func @transform_0(%arg0: i32) -> (i32, i32) {
    %c0_i32 = arith.constant 0 : i32
    %c0_i32_0 = arith.constant 0 : i32
    return %arg0, %c0_i32 : i32, i32
  }
  func.func @transform_1(%arg0: i32) -> (i32, i32) {
    %c0_i32 = arith.constant 0 : i32
    %c0_i32_0 = arith.constant 0 : i32
    %c0_i32_1 = arith.constant 0 : i32
    return %c0_i32, %c0_i32_0 : i32, i32
  }
  func.func @transform_2(%arg0: i32) -> (i32, i32) {
    %c0_i32 = arith.constant 0 : i32
    %c0_i32_0 = arith.constant 0 : i32
    %c0_i32_1 = arith.constant 0 : i32
    return %c0_i32, %c0_i32_0 : i32, i32
  }
  func.func @transform_3(%arg0: i32) -> (i32, i32) {
    %c0_i32 = arith.constant 0 : i32
    %c0_i32_0 = arith.constant 0 : i32
    return %arg0, %c0_i32 : i32, i32
  }
}

</mosaic_0001>

<bundles_post_ra>
// kernel: a_call__.1
= control target key start
LH: loop header
LB: loop body
LE: loop exit
PB: predicated region body
PF: predicated region fallthrough
CT: control target
= control target key end

     0   :  { %v165_v1 = vmov 0.0   ;;  %vm166_vm0 = vmmov 0   ;;  %s217_s0 = inlined_call_operand.vmem [shape: f32[16,32], index: 0, kind: input, shape index: {}]   ;;  %s218_s1 = inlined_call_operand.vmem [shape: bf16[32,128], index: 1, kind: input, shape index: {}]   ;;  %s219_s2 = inlined_call_operand.vmem [shape: f32[1,128], index: 2, kind: input, shape index: {}]   ;;  %s220_s3 = inlined_call_operand.hbm [shape: f32[16,128], index: 3, kind: output, shape index: {}]  }
   0x1   :  { %v135_v0 = vld [vmem:[%s218_s1] sm:$0xff]   ;;  %122 = vmatprep.subr.bf16.mxu0 %v165_v1  ;;  %v136_v2 = vld [vmem:[%s218_s1 + $0x8] sm:$0xff]   ;;  %126 = vmatprep.mubr.msk.bf16.mxu0 %vm166_vm0, %v165_v1 }
   0x2   :  { %123 = vmatpush3.bf16.msra.mxu0 %v135_v0  ;;  %v16_v3 = vld [vmem:[%s217_s0] sm:$0xff]  ;;  %v17_v4 = vld [vmem:[%s217_s0 + $0x8] sm:$0xff] }
   0x3   :  { %124 = vmatprep.subr.bf16.mxu0 %v165_v1 }
   0x4   :  { %8 = vsyncpa [#allocation3], 0  ;;  %v18_v5 = vpack.c.bf16 %v17_v4, %v16_v3  ;;  %vm42_vm1 = vcmask 261120   ;;  %v115_v6 = vld [vmem:[%s219_s2] ss:$0 sm:$0xff]  ;;  %s167_s0 = smov [#allocation2]  }
   0x5   :  { %s104_s1 = sshll.u32 %s167_s0, 4  ;;  %s105_s1 = int_to_ptr.vmem [resolvable:$true] %s104_s1 }
   0x6   :  { %125 = vmatpush3.bf16.msra.mxu0 %v136_v2  ;;  %s141_s2 = scalar_lea.vmem %s105_s1, 256  ;;  %p146_p1 = scmp.lt.s32.totalorder %s105_s1, %s105_s1 }
   0x7   :  { %p142_p0 = scmp.ne.s32.totalorder %s105_s1, %s141_s2  ;;  %p147_p2 = scmp.lt.s32.totalorder %s141_s2, %s141_s2 }
   0x9   :  { %127 = vmatmul.mubr.msk.bf16.vlgmr.msra.gmra.mrb[0].mxu0 %vm42_vm1, %v18_v5  ;;  %p148_p3 = por %p147_p2, %p146_p1 }
   0xb   :  { %p149_p4 = pnand %p148_p3, %p142_p0 }
  0xdc   :  { %v80_v7 = vpop.f32.mrb[0].mxu0 }
  0xdd   :  { %v81_v8 = vadd.f32 %v115_v6, %v80_v7  ;;  %v128_v9 = vpop.f32.mrb[1].mxu0 }
  0xde   :  { %v83_v10 = vpop.f32.mrb[2].mxu0 }
  0xdf   :  { %v89_v11 = vmul.f32 0.70710677, %v81_v8  ;;  %v84_v12 = vadd.f32 %v115_v6, %v83_v10  ;;  %v129_v13 = vpop.f32.mrb[3].mxu0  ;;  %v87_v16 = vmul.f32 0.5, %v81_v8 }
  0xe1   :  { %137 = verf.f32 %v89_v11  ;;  %v90_v14 = vmul.f32 0.70710677, %v84_v12  ;;  %v88_v20 = vmul.f32 0.5, %v84_v12 }
  0xe3   :  { %139 = verf.f32 %v90_v14 }
  0xeb   :  { %v138_v15 = vpop.eup %137 }
  0xec   :  { %v93_v17 = vadd.f32 1.0, %v138_v15 }
  0xed   :  { %v140_v18 = vpop.eup %139 }
  0xee   :  { %v95_v19 = vmul.f32 %v93_v17, %v87_v16  ;;  %v94_v21 = vadd.f32 1.0, %v140_v18 }
  0xf0   :  { %97 = vst [vmem:[#allocation2] sm:$0xff] %v95_v19  ;;  %v96_v22 = vmul.f32 %v94_v21, %v88_v20 }
  0xf2   :  { %98 = vst [vmem:[#allocation2 + $0x8] sm:$0xff] %v96_v22 }
  0xf3   :  { %152 = shalt.err (!%p149_p4)
}
  0xf4   :  { %s153_s24 = scalar_lea.hbm %s220_s3, 256 }
  0xf5   :  { %p154_p5 = scmp.ne.s32.totalorder %s220_s3, %s153_s24  ;;  %p157_p6 = scmp.lt.u32.totalorder %s153_s24, %s220_s3 }
  0xf7   :  { %p159_p7 = pnand %p157_p6, %p154_p5 }
  0xf9   :  { %162 = shalt.err (!%p159_p7)
}
  0xfa   :  { %s168_s29 = smov 128   ;;  %s169_s30 = smov 8  }
  0xfb   :  { %110 = dma.vmem_to_hbm [thread:$0]  %s105_s1, 256, %s220_s3, [#allocation3], %s168_s29, %s168_s29, %s169_s30  }
  0xfc   :  { %163 = dma.done.wait [#allocation3], 256  }
  0xfd   :  { %164 = vsyncadd [#allocation3], 4294967040 }
  0xfe   :  { %114 = vsyncpa [#allocation3], 1 }

</bundles_post_ra>
